<compile_context>
chip_gen: v5e
topology: v5e:2x2
jax: 0.10.0
libtpu: 0.0.40
codegen_flags: <defaults>
</compile_context>

<pallas_src>
import jax
import jax.numpy as jnp
from jax.experimental import pallas as pl
from jax.experimental.pallas import tpu as pltpu

EMBED_DIM = 256


def _add_pos_kernel(x_ref, p_ref, o_ref):
    """x_ref: (bb, bn, D), p_ref: (1, bn, D), o_ref: (bb, bn, D)."""
    o_ref[...] = x_ref[...] + p_ref[...]  # VPU broadcast-add over the batch dim


def _pick_bn(N, D, itemsize, target_bytes):
    """Sequence-tile size: full N if it fits, else the largest divisor of N
    that is a multiple of 8 (sublane alignment) and fits the budget."""
    if N * D * itemsize <= target_bytes:
        return N
    best = None
    for bn in range(8, N + 1, 8):
        if N % bn == 0 and bn * D * itemsize <= target_bytes:
            best = bn
    return best if best is not None else N


def _pick_bb(B, bn, D, itemsize, target_bytes):
    """Batch-tile size: largest divisor of B whose (bb, bn, D) block fits."""
    cap = max(1, target_bytes // max(1, bn * D * itemsize))
    cap = min(B, cap)
    for bb in range(cap, 0, -1):
        if B % bb == 0:
            return bb
    return 1


@jax.jit
def position_embedding_forward(x, pos_embedding):
    """Matches PyTorch LearnablePositionEmbeddings.forward: x + pos."""
    B, N, D = x.shape
    assert pos_embedding.shape == (1, N, D), pos_embedding.shape

    itemsize = jnp.dtype(x.dtype).itemsize
    target_block_bytes = 2 * 1024 * 1024  # per x block (Pallas double-buffers)

    bn = _pick_bn(N, D, itemsize, target_block_bytes)
    bb = _pick_bb(B, bn, D, itemsize, target_block_bytes)

    # Grid = (seq_tiles, batch_tiles); batch (last axis) iterates fastest so
    # the pos tile (indexed only by the seq axis) stays resident in VMEM
    # across the inner batch loop.
    grid = (N // bn, B // bb)

    out = pl.pallas_call(
        _add_pos_kernel,
        out_shape=jax.ShapeDtypeStruct((B, N, D), x.dtype),
        grid_spec=pltpu.PrefetchScalarGridSpec(
            num_scalar_prefetch=0,
            grid=grid,
            in_specs=[
                pl.BlockSpec((bb, bn, D), lambda j, i: (i, j, 0)),
                pl.BlockSpec((1, bn, D), lambda j, i: (0, j, 0)),
            ],
            out_specs=pl.BlockSpec((bb, bn, D), lambda j, i: (i, j, 0)),
        ),
        compiler_params=pltpu.CompilerParams(
            dimension_semantics=("parallel", "parallel")),
    )(x, pos_embedding)
    return out


if __name__ == "__main__":
    key = jax.random.PRNGKey(0)
    kx, kp = jax.random.split(key, 2)

    # Small shapes consistent with the module: batch=2, N=8 tokens, D=256.
    B, N, D = 2, 8, EMBED_DIM
    x = jax.random.normal(kx, (B, N, D), dtype=jnp.float32)
    pos = jax.random.normal(kp, (1, N, D), dtype=jnp.float32)

    out = position_embedding_forward(x, pos)
    out = jax.block_until_ready(out)

    ref = x + pos  # pure-JAX reference mirroring the PyTorch module
    assert out.shape == ref.shape == (B, N, D), out.shape
    max_err = float(jnp.max(jnp.abs(out - ref)))
    assert max_err < 1e-6, f"max abs error too large: {max_err}"

    print("KERNEL_OK")
</pallas_src>

<mosaic_0001>
module attributes {stable_mosaic.version = 11 : i64} {
  func.func @_add_pos_kernel(%arg0: i32, %arg1: i32, %arg2: memref<2x8x256xf32, #tpu.memory_space<vmem>>, %arg3: memref<1x8x256xf32, #tpu.memory_space<vmem>>, %arg4: memref<2x8x256xf32, #tpu.memory_space<vmem>>) attributes {dimension_semantics = [#tpu.dimension_semantics<parallel>, #tpu.dimension_semantics<parallel>], iteration_bounds = array<i64: 1, 1>, scalar_prefetch = 0 : i64, scratch_operands = 0 : i64, tpu.core_type = #tpu.core_type<tc>, window_params = [{transform_indices = @transform_0, window_bounds = array<i64: 2, 8, 256>}, {transform_indices = @transform_1, window_bounds = array<i64: 1, 8, 256>}, {transform_indices = @transform_2, window_bounds = array<i64: 2, 8, 256>}]} {
    %c0 = arith.constant 0 : index
    %c0_0 = arith.constant 0 : index
    %c0_1 = arith.constant 0 : index
    %0 = vector.load %arg2[%c0, %c0_0, %c0_1] : memref<2x8x256xf32, #tpu.memory_space<vmem>>, vector<2x8x256xf32>
    %c0_2 = arith.constant 0 : index
    %c0_3 = arith.constant 0 : index
    %c0_4 = arith.constant 0 : index
    %1 = vector.load %arg3[%c0_2, %c0_3, %c0_4] : memref<1x8x256xf32, #tpu.memory_space<vmem>>, vector<1x8x256xf32>
    %2 = vector.broadcast %1 : vector<1x8x256xf32> to vector<2x8x256xf32>
    %3 = arith.addf %0, %2 : vector<2x8x256xf32>
    %c0_5 = arith.constant 0 : index
    %c0_6 = arith.constant 0 : index
    %c0_7 = arith.constant 0 : index
    %4 = vector.load %arg4[%c0_5, %c0_6, %c0_7] : memref<2x8x256xf32, #tpu.memory_space<vmem>>, vector<2x8x256xf32>
    tpu.vector_store %arg4[%c0_5, %c0_6, %c0_7], %3 {strides = array<i32>} : memref<2x8x256xf32, #tpu.memory_space<vmem>>, vector<2x8x256xf32>,
    return
  }
  func.func @transform_0(%arg0: i32, %arg1: i32) -> (i32, i32, i32) {
    %c0_i32 = arith.constant 0 : i32
    %c0_i32_0 = arith.constant 0 : i32
    return %arg1, %arg0, %c0_i32 : i32, i32, i32
  }
  func.func @transform_1(%arg0: i32, %arg1: i32) -> (i32, i32, i32) {
    %c0_i32 = arith.constant 0 : i32
    %c0_i32_0 = arith.constant 0 : i32
    %c0_i32_1 = arith.constant 0 : i32
    return %c0_i32, %arg0, %c0_i32_0 : i32, i32, i32
  }
  func.func @transform_2(%arg0: i32, %arg1: i32) -> (i32, i32, i32) {
    %c0_i32 = arith.constant 0 : i32
    %c0_i32_0 = arith.constant 0 : i32
    return %arg1, %arg0, %c0_i32 : i32, i32, i32
  }
}

</mosaic_0001>

<bundles_post_ra>
// kernel: position_embedding_forward.1
= control target key start
LH: loop header
LB: loop body
LE: loop exit
PB: predicated region body
PF: predicated region fallthrough
CT: control target
= control target key end

     0   :  { %7 = vsyncpa [#allocation3], 0  ;;  %s194_s0 = inlined_call_operand.hbm [shape: f32[2,8,256], index: 0, kind: input, shape index: {}]   ;;  %s195_s1 = inlined_call_operand.hbm [shape: f32[1,8,256], index: 1, kind: input, shape index: {}]   ;;  %s196_s2 = inlined_call_operand.hbm [shape: f32[2,8,256], index: 2, kind: output, shape index: {}]  }
   0x1   :  { %8 = vsyncpa [#allocation6], 0 }
   0x2   :  { %9 = vsyncpa [#allocation4], 0  ;;  %s14_s11 = sshll.u32 %s194_s0, 4  ;;  %s159_s12 = smov [#allocation2]   ;;  %s15_s11 = int_to_ptr.hbm [resolvable:$true] %s14_s11 }
   0x3   :  { %s16_s13 = sshll.u32 %s159_s12, 4  ;;  %s28_s16 = sshll.u32 %s195_s1, 4  ;;  %s17_s13 = int_to_ptr.vmem [resolvable:$true] %s16_s13  ;;  %s29_s16 = int_to_ptr.hbm [resolvable:$true] %s28_s16 }
   0x4   :  { %s160_s17 = smov 256   ;;  %s161_s18 = smov 16  }
   0x5   :  { %22 = dma.hbm_to_vmem [thread:$0]  %s15_s11, 512, %s17_s13, [#allocation3], %s160_s17, %s160_s17, %s161_s18  }
   0x6   :  { %s162_s19 = smov [#allocation5]  }
   0x7   :  { %s30_s20 = sshll.u32 %s162_s19, 4  ;;  %s31_s20 = int_to_ptr.vmem [resolvable:$true] %s30_s20 }
   0x8   :  { %33 = dma.hbm_to_vmem [thread:$0]  %s29_s16, 256, %s31_s20, [#allocation6]  }
   0x9   :  { %153 = dma.done.wait [#allocation3], 512  }
   0xa   :  { %154 = vsyncadd [#allocation3], 4294966784 }
   0xb   :  { %155 = dma.done.wait [#allocation6], 256  }
   0xc   :  { %156 = vsyncadd [#allocation6], 4294967040  ;;  %v42_v0 = vld [vmem:[#allocation2] sm:$0xff]  ;;  %v43_v2 = vld [vmem:[#allocation2 + $0x8] sm:$0xff]  ;;  %s163_s0 = smov [#allocation7]   ;;  %s62_s23 = sshll.u32 %s196_s2, 4  ;;  %s63_s23 = int_to_ptr.hbm [resolvable:$true] %s62_s23 }
   0xd   :  { %v46_v1 = vld [vmem:[#allocation5] sm:$0xff]  ;;  %v47_v4 = vld [vmem:[#allocation5 + $0x8] sm:$0xff]  ;;  %v44_v5 = vld [vmem:[#allocation2 + $0x10] sm:$0xff]  ;;  %s60_s1 = sshll.u32 %s163_s0, 4  ;;  %s61_s1 = int_to_ptr.vmem [resolvable:$true] %s60_s1 }
   0xe   :  { %v48_v3 = vadd.f32 %v46_v1, %v42_v0  ;;  %v45_v6 = vld [vmem:[#allocation2 + $0x18] sm:$0xff]  ;;  %v49_v7 = vadd.f32 %v47_v4, %v43_v2  ;;  %v50_v8 = vadd.f32 %v46_v1, %v44_v5 }
   0xf   :  { %v51_v9 = vadd.f32 %v47_v4, %v45_v6 }
  0x10   :  { %52 = vst [vmem:[#allocation7] sm:$0xff] %v48_v3 }
  0x11   :  { %53 = vst [vmem:[#allocation7 + $0x8] sm:$0xff] %v49_v7 }
  0x12   :  { %54 = vst [vmem:[#allocation7 + $0x10] sm:$0xff] %v50_v8 }
  0x13   :  { %55 = vst [vmem:[#allocation7 + $0x18] sm:$0xff] %v51_v9 }
  0x14   :  { %68 = dma.vmem_to_hbm [thread:$0]  %s61_s1, 512, %s63_s23, [#allocation4], %s160_s17, %s160_s17, %s161_s18  }
  0x15   :  { %157 = dma.done.wait [#allocation4], 512  }
  0x16   :  { %158 = vsyncadd [#allocation4], 4294966784 }
  0x17   :  { %73 = vsyncpa [#allocation3], 1 }
  0x18   :  { %74 = vsyncpa [#allocation6], 1 }
  0x19   :  { %75 = vsyncpa [#allocation4], 1 }

</bundles_post_ra>
